<compile_context>
chip_gen: v7x
topology: tpu7x:2x2x1
jax: 0.10.0
libtpu: 0.0.40
codegen_flags: <defaults>
</compile_context>

<pallas_src>
import functools

import jax
import jax.numpy as jnp
from jax.experimental import pallas as pl
from jax.experimental.pallas import tpu as pltpu


# ----------------------------- kernel ---------------------------------------


def club_sample_kernel(
    x_ref, y_ref, ys_ref,                 # streamed [TM, x_dim], [TM, y_dim] x2
    w1_ref, b1_ref, w2_ref, b2_ref, w3_ref, b3_ref,   # fused (resident) params
    out_ref,                              # (1,1) f32 accumulator / result
    *, n_rows, block_rows, y_dim, compute_dtype,
):
    i = pl.program_id(0)

    @pl.when(i == 0)
    def _init():
        out_ref[...] = jnp.zeros_like(out_ref)

    x = x_ref[...]          # f32 tile
    y = y_ref[...]          # f32 tile
    ys = ys_ref[...]        # f32 tile (y[perm])

    # Fused two-branch MLP: one matmul per layer (block-diagonal weights).
    # MXU operands in `compute_dtype` (bf16 for speed), f32 accumulation.
    hg = jnp.dot(x.astype(compute_dtype), w1_ref[...],
                 preferred_element_type=jnp.float32) + b1_ref[...]
    hg = jnp.maximum(hg, 0.0)
    hg = jnp.dot(hg.astype(compute_dtype), w2_ref[...],
                 preferred_element_type=jnp.float32) + b2_ref[...]
    hg = jnp.maximum(hg, 0.0)
    ml = jnp.dot(hg.astype(compute_dtype), w3_ref[...],
                 preferred_element_type=jnp.float32) + b3_ref[...]

    mu = ml[:, :y_dim]                       # p_mu head
    logvar = jnp.tanh(ml[:, y_dim:])         # p_logvar head (Tanh)
    inv_var = jnp.exp(-logvar)               # EUP

    # positive - negative, folded:
    #   -(mu-y)^2/e^lv + (mu-ys)^2/e^lv = (y - ys) * (2*mu - y - ys) * e^{-lv}
    d = y - ys
    diff = d * (2.0 * mu - y - ys) * inv_var                 # [TM, Y]
    per_row = jnp.sum(diff, axis=-1, keepdims=True)          # [TM, 1]

    # Mask padded rows of the last (partial) tile so the mean uses the true N.
    row = jax.lax.broadcasted_iota(jnp.int32, (block_rows, 1), 0) + i * block_rows
    per_row = jnp.where(row < n_rows, per_row, 0.0)

    out_ref[...] += jnp.sum(per_row, axis=0, keepdims=True)  # [1, 1]

    @pl.when(i == pl.num_programs(0) - 1)
    def _finalize():
        out_ref[...] = out_ref[...] * (0.5 / n_rows)         # .mean() / 2


# ----------------------------- wrapper ---------------------------------------


def _round_up(a, b):
    return ((a + b - 1) // b) * b


def club_sample_forward(x, y, y_shuf, fused_params, *, block_rows=256,
                        compute_dtype=jnp.float32):
    """CLUBSample.forward.  `fused_params` from fuse_params(); `y_shuf` = y[perm]."""
    w1, b1, w2, b2, w3, b3 = fused_params
    n, x_dim = x.shape
    _, y_dim = y.shape
    two_h = w1.shape[1]
    assert w2.shape == (two_h, two_h) and w3.shape == (two_h, 2 * y_dim)
    assert block_rows % 8 == 0, "batch tile must be a multiple of 8 (sublanes)"

    tm = min(block_rows, _round_up(n, 8))
    grid_n = pl.cdiv(n, tm)

    stream = lambda i: (i, 0)        # x / y / y_shuf: new tile per grid step
    resident = lambda i: (0, 0)      # weights/biases: stay in VMEM

    kernel = functools.partial(
        club_sample_kernel,
        n_rows=n, block_rows=tm, y_dim=y_dim, compute_dtype=compute_dtype)

    out = pl.pallas_call(
        kernel,
        out_shape=jax.ShapeDtypeStruct((1, 1), jnp.float32),
        grid=(grid_n,),
        in_specs=[
            pl.BlockSpec((tm, x_dim), stream),
            pl.BlockSpec((tm, y_dim), stream),
            pl.BlockSpec((tm, y_dim), stream),
            pl.BlockSpec((x_dim, two_h), resident),
            pl.BlockSpec((1, two_h), resident),
            pl.BlockSpec((two_h, two_h), resident),
            pl.BlockSpec((1, two_h), resident),
            pl.BlockSpec((two_h, 2 * y_dim), resident),
            pl.BlockSpec((1, 2 * y_dim), resident),
        ],
        out_specs=pl.BlockSpec((1, 1), lambda i: (0, 0)),
        compiler_params=pltpu.CompilerParams(
            dimension_semantics=("arbitrary",),          # feeds the accumulator
            vmem_limit_bytes=32 * 1024 * 1024,
        ),
    )(x, y, y_shuf, w1, b1, w2, b2, w3, b3)
    # TODO(synk): on v7x, add a leading size-2 "parallel" grid axis with per-core
    # partial sums to use both TensorCores; single scalar accumulator keeps the
    # grid serial today (no-op on single-TC v5e/v6e).
    return out[0, 0]


# --------------------------- params / reference ------------------------------


def init_linear(key, in_dim, out_dim):
    # Weight stored [in_dim, out_dim] (so y = x @ W + b), bias [1, out_dim].
    kw, kb = jax.random.split(key)
    scale = 1.0 / jnp.sqrt(jnp.float32(in_dim))
    w = jax.random.uniform(kw, (in_dim, out_dim), jnp.float32, -scale, scale)
    b = jax.random.uniform(kb, (1, out_dim), jnp.float32, -scale, scale)
    return w, b


def make_params(key, x_dim, y_dim, hidden):
    keys = jax.random.split(key, 6)
    w1, b1 = init_linear(keys[0], x_dim, hidden)
    w2, b2 = init_linear(keys[1], hidden, hidden)
    w3, b3 = init_linear(keys[2], hidden, y_dim)
    v1, c1 = init_linear(keys[3], x_dim, hidden)
    v2, c2 = init_linear(keys[4], hidden, hidden)
    v3, c3 = init_linear(keys[5], hidden, y_dim)
    return (w1, b1, w2, b2, w3, b3, v1, c1, v2, c2, v3, c3)


def fuse_params(raw_params, compute_dtype=jnp.float32):
    """Fuse p_mu / p_logvar into block-diagonal weights (exact transformation)."""
    (w1, b1, w2, b2, w3, b3, v1, c1, v2, c2, v3, c3) = raw_params
    h = w1.shape[1]
    ydim = w3.shape[1]
    zh = jnp.zeros((h, h), jnp.float32)
    zy = jnp.zeros((h, ydim), jnp.float32)
    W1 = jnp.concatenate([w1, v1], axis=1)                 # [x_dim, 2H]
    W2 = jnp.block([[w2, zh], [zh, v2]])                   # [2H, 2H]
    W3 = jnp.block([[w3, zy], [zy, v3]])                   # [2H, 2Y]
    B1 = jnp.concatenate([b1, c1], axis=1)                 # [1, 2H]
    B2 = jnp.concatenate([b2, c2], axis=1)                 # [1, 2H]
    B3 = jnp.concatenate([b3, c3], axis=1)                 # [1, 2Y]
    # Weights in MXU compute dtype; biases stay f32 (added to f32 accumulators).
    return (W1.astype(compute_dtype), B1,
            W2.astype(compute_dtype), B2,
            W3.astype(compute_dtype), B3)


def reference_forward(x, y, y_shuf, raw_params, compute_dtype=jnp.float32):
    """Plain-JAX CLUBSample.forward (exact module semantics at f32)."""
    (w1, b1, w2, b2, w3, b3, v1, c1, v2, c2, v3, c3) = raw_params

    def lin(a, w, b):
        return jnp.dot(a.astype(compute_dtype), w.astype(compute_dtype),
                       preferred_element_type=jnp.float32) + b

    h = jnp.maximum(lin(x, w1, b1), 0.0)
    h = jnp.maximum(lin(h, w2, b2), 0.0)
    mu = lin(h, w3, b3)
    g = jnp.maximum(lin(x, v1, c1), 0.0)
    g = jnp.maximum(lin(g, v2, c2), 0.0)
    logvar = jnp.tanh(lin(g, v3, c3))
    pos = -((mu - y) ** 2) / jnp.exp(logvar)
    neg = -((mu - y_shuf) ** 2) / jnp.exp(logvar)
    return (pos.sum(-1) - neg.sum(-1)).mean() / 2.0


# ----------------------------------- main -------------------------------------


if __name__ == "__main__":
    # Fused widths (2H = 128, 2Y = 128) are lane-dense; N=28 with an 8-row tile
    # exercises multi-step accumulation and remainder-row masking.
    N, X_DIM, Y_DIM, HIDDEN = 28, 32, 64, 64

    key = jax.random.PRNGKey(0)
    k_x, k_y, k_perm, k_params = jax.random.split(key, 4)

    x = jax.random.normal(k_x, (N, X_DIM), jnp.float32)
    y = jax.random.normal(k_y, (N, Y_DIM), jnp.float32)
    raw = make_params(k_params, X_DIM, Y_DIM, HIDDEN)

    # torch.randperm(sample_size) equivalent (deterministic host-side glue).
    perm = jax.random.permutation(k_perm, N)
    y_shuf = y[perm]

    # --- f32 path: exact module semantics (tight tolerance) ---
    p32 = fuse_params(raw, jnp.float32)
    out32 = jax.block_until_ready(
        club_sample_forward(x, y, y_shuf, p32, block_rows=8,
                            compute_dtype=jnp.float32))
    ref32 = reference_forward(x, y, y_shuf, raw, jnp.float32)
    assert jnp.allclose(out32, ref32, atol=1e-4, rtol=1e-4), (out32, ref32)

    # --- bf16-MXU path (f32 accumulation) vs matching-precision reference ---
    pbf = fuse_params(raw, jnp.bfloat16)
    outbf = jax.block_until_ready(
        club_sample_forward(x, y, y_shuf, pbf, block_rows=8,
                            compute_dtype=jnp.bfloat16))
    refbf = reference_forward(x, y, y_shuf, raw, jnp.bfloat16)
    assert jnp.allclose(outbf, refbf, atol=1e-3, rtol=1e-3), (outbf, refbf)

    print("KERNEL_OK")
</pallas_src>

<mosaic_0001>
module attributes {stable_mosaic.version = 11 : i64} {
  func.func @club_sample_kernel(%arg0: i32, %arg1: memref<8x32xf32, #tpu.memory_space<vmem>>, %arg2: memref<8x64xf32, #tpu.memory_space<vmem>>, %arg3: memref<8x64xf32, #tpu.memory_space<vmem>>, %arg4: memref<32x128xf32, #tpu.memory_space<vmem>>, %arg5: memref<1x128xf32, #tpu.memory_space<vmem>>, %arg6: memref<128x128xf32, #tpu.memory_space<vmem>>, %arg7: memref<1x128xf32, #tpu.memory_space<vmem>>, %arg8: memref<128x128xf32, #tpu.memory_space<vmem>>, %arg9: memref<1x128xf32, #tpu.memory_space<vmem>>, %arg10: memref<1x1xf32, #tpu.memory_space<vmem>>) attributes {dimension_semantics = [#tpu.dimension_semantics<arbitrary>], iteration_bounds = array<i64: 4>, scalar_prefetch = 0 : i64, scratch_operands = 0 : i64, tpu.core_type = #tpu.core_type<tc>, window_params = [{transform_indices = @transform_0, window_bounds = array<i64: 8, 32>}, {transform_indices = @transform_1, window_bounds = array<i64: 8, 64>}, {transform_indices = @transform_2, window_bounds = array<i64: 8, 64>}, {pipeline_mode = #tpu.pipeline_mode<synchronous>, transform_indices = @transform_3, window_bounds = array<i64: 32, 128>}, {pipeline_mode = #tpu.pipeline_mode<synchronous>, transform_indices = @transform_4, window_bounds = array<i64: 1, 128>}, {pipeline_mode = #tpu.pipeline_mode<synchronous>, transform_indices = @transform_5, window_bounds = array<i64: 128, 128>}, {pipeline_mode = #tpu.pipeline_mode<synchronous>, transform_indices = @transform_6, window_bounds = array<i64: 1, 128>}, {pipeline_mode = #tpu.pipeline_mode<synchronous>, transform_indices = @transform_7, window_bounds = array<i64: 128, 128>}, {pipeline_mode = #tpu.pipeline_mode<synchronous>, transform_indices = @transform_8, window_bounds = array<i64: 1, 128>}, {pipeline_mode = #tpu.pipeline_mode<synchronous>, transform_indices = @transform_9, window_bounds = array<i64: 1, 1>}]} {
    %c0_i32 = arith.constant 0 : i32
    %0 = arith.cmpi eq, %arg0, %c0_i32 : i32
    %1 = arith.extui %0 : i1 to i32
    %c0_i32_0 = arith.constant 0 : i32
    %2 = arith.cmpi ne, %1, %c0_i32_0 : i32
    scf.if %2 {
      %cst_32 = arith.constant 0.000000e+00 : f32
      %56 = vector.broadcast %cst_32 : f32 to vector<1x1xf32>
      %c0_33 = arith.constant 0 : index
      %c0_34 = arith.constant 0 : index
      %57 = vector.load %arg10[%c0_33, %c0_34] : memref<1x1xf32, #tpu.memory_space<vmem>>, vector<1x1xf32>
      tpu.vector_store %arg10[%c0_33, %c0_34], %56 {strides = array<i32>} : memref<1x1xf32, #tpu.memory_space<vmem>>, vector<1x1xf32>,
    } else {
    }
    %c0 = arith.constant 0 : index
    %c0_1 = arith.constant 0 : index
    %3 = vector.load %arg1[%c0, %c0_1] : memref<8x32xf32, #tpu.memory_space<vmem>>, vector<8x32xf32>
    %c0_2 = arith.constant 0 : index
    %c0_3 = arith.constant 0 : index
    %4 = vector.load %arg2[%c0_2, %c0_3] : memref<8x64xf32, #tpu.memory_space<vmem>>, vector<8x64xf32>
    %c0_4 = arith.constant 0 : index
    %c0_5 = arith.constant 0 : index
    %5 = vector.load %arg3[%c0_4, %c0_5] : memref<8x64xf32, #tpu.memory_space<vmem>>, vector<8x64xf32>
    %c0_6 = arith.constant 0 : index
    %c0_7 = arith.constant 0 : index
    %6 = vector.load %arg4[%c0_6, %c0_7] : memref<32x128xf32, #tpu.memory_space<vmem>>, vector<32x128xf32>
    %cst = arith.constant dense<0.000000e+00> : vector<8x128xf32>
    %7 = tpu.matmul %3, %6, %cst {dimension_numbers = #tpu.dot_dimension_numbers<[1], [0], [0], [1], [0, 0, 1, 1], [], []>} : vector<8x32xf32>, vector<32x128xf32>, vector<8x128xf32> -> vector<8x128xf32>
    %c0_8 = arith.constant 0 : index
    %c0_9 = arith.constant 0 : index
    %8 = vector.load %arg5[%c0_8, %c0_9] : memref<1x128xf32, #tpu.memory_space<vmem>>, vector<1x128xf32>
    %9 = vector.broadcast %8 : vector<1x128xf32> to vector<8x128xf32>
    %10 = arith.addf %7, %9 : vector<8x128xf32>
    %cst_10 = arith.constant 0.000000e+00 : f32
    %11 = vector.broadcast %cst_10 : f32 to vector<8x128xf32>
    %12 = arith.maximumf %10, %11 : vector<8x128xf32>
    %c0_11 = arith.constant 0 : index
    %c0_12 = arith.constant 0 : index
    %13 = vector.load %arg6[%c0_11, %c0_12] : memref<128x128xf32, #tpu.memory_space<vmem>>, vector<128x128xf32>
    %cst_13 = arith.constant dense<0.000000e+00> : vector<8x128xf32>
    %14 = tpu.matmul %12, %13, %cst_13 {dimension_numbers = #tpu.dot_dimension_numbers<[1], [0], [0], [1], [0, 0, 1, 1], [], []>} : vector<8x128xf32>, vector<128x128xf32>, vector<8x128xf32> -> vector<8x128xf32>
    %c0_14 = arith.constant 0 : index
    %c0_15 = arith.constant 0 : index
    %15 = vector.load %arg7[%c0_14, %c0_15] : memref<1x128xf32, #tpu.memory_space<vmem>>, vector<1x128xf32>
    %16 = vector.broadcast %15 : vector<1x128xf32> to vector<8x128xf32>
    %17 = arith.addf %14, %16 : vector<8x128xf32>
    %cst_16 = arith.constant 0.000000e+00 : f32
    %18 = vector.broadcast %cst_16 : f32 to vector<8x128xf32>
    %19 = arith.maximumf %17, %18 : vector<8x128xf32>
    %c0_17 = arith.constant 0 : index
    %c0_18 = arith.constant 0 : index
    %20 = vector.load %arg8[%c0_17, %c0_18] : memref<128x128xf32, #tpu.memory_space<vmem>>, vector<128x128xf32>
    %cst_19 = arith.constant dense<0.000000e+00> : vector<8x128xf32>
    %21 = tpu.matmul %19, %20, %cst_19 {dimension_numbers = #tpu.dot_dimension_numbers<[1], [0], [0], [1], [0, 0, 1, 1], [], []>} : vector<8x128xf32>, vector<128x128xf32>, vector<8x128xf32> -> vector<8x128xf32>
    %c0_20 = arith.constant 0 : index
    %c0_21 = arith.constant 0 : index
    %22 = vector.load %arg9[%c0_20, %c0_21] : memref<1x128xf32, #tpu.memory_space<vmem>>, vector<1x128xf32>
    %23 = vector.broadcast %22 : vector<1x128xf32> to vector<8x128xf32>
    %24 = arith.addf %21, %23 : vector<8x128xf32>
    %25 = vector.extract_strided_slice %24 {offsets = [0, 0], sizes = [8, 64], strides = [1, 1]} : vector<8x128xf32> to vector<8x64xf32>
    %26 = vector.extract_strided_slice %24 {offsets = [0, 64], sizes = [8, 64], strides = [1, 1]} : vector<8x128xf32> to vector<8x64xf32>
    %27 = math.tanh %26 : vector<8x64xf32>
    %cst_22 = arith.constant 0.000000e+00 : f32
    %28 = vector.broadcast %cst_22 : f32 to vector<8x64xf32>
    %29 = arith.subf %28, %27 : vector<8x64xf32>
    %30 = math.exp %29 : vector<8x64xf32>
    %31 = arith.subf %4, %5 : vector<8x64xf32>
    %cst_23 = arith.constant 2.000000e+00 : f32
    %32 = vector.broadcast %cst_23 : f32 to vector<8x64xf32>
    %33 = arith.mulf %32, %25 : vector<8x64xf32>
    %34 = arith.subf %33, %4 : vector<8x64xf32>
    %35 = arith.subf %34, %5 : vector<8x64xf32>
    %36 = arith.mulf %31, %35 : vector<8x64xf32>
    %37 = arith.mulf %36, %30 : vector<8x64xf32>
    %cst_24 = arith.constant dense<0.000000e+00> : vector<8xf32>
    %38 = vector.multi_reduction <add>, %37, %cst_24 [1] : vector<8x64xf32> to vector<8xf32>
    %39 = vector.shape_cast %38 : vector<8xf32> to vector<8x1xf32>
    %40 = tpu.iota {dimensions = array<i32: 0>} : vector<8x1xi32>
    %c8_i32 = arith.constant 8 : i32
    %41 = arith.muli %arg0, %c8_i32 : i32
    %42 = vector.broadcast %41 : i32 to vector<8x1xi32>
    %43 = arith.addi %40, %42 : vector<8x1xi32>
    %c28_i32 = arith.constant 28 : i32
    %44 = vector.broadcast %c28_i32 : i32 to vector<8x1xi32>
    %45 = arith.cmpi slt, %43, %44 : vector<8x1xi32>
    %cst_25 = arith.constant 0.000000e+00 : f32
    %46 = vector.broadcast %cst_25 : f32 to vector<8x1xf32>
    %47 = arith.select %45, %39, %46 : vector<8x1xi1>, vector<8x1xf32>
    %c0_26 = arith.constant 0 : index
    %c0_27 = arith.constant 0 : index
    %48 = vector.load %arg10[%c0_26, %c0_27] : memref<1x1xf32, #tpu.memory_space<vmem>>, vector<1x1xf32>
    %cst_28 = arith.constant dense<0.000000e+00> : vector<1xf32>
    %49 = vector.multi_reduction <add>, %47, %cst_28 [0] : vector<8x1xf32> to vector<1xf32>
    %50 = vector.shape_cast %49 : vector<1xf32> to vector<1x1xf32>
    %51 = arith.addf %48, %50 : vector<1x1xf32>
    %c0_29 = arith.constant 0 : index
    %c0_30 = arith.constant 0 : index
    %52 = vector.load %arg10[%c0_29, %c0_30] : memref<1x1xf32, #tpu.memory_space<vmem>>, vector<1x1xf32>
    tpu.vector_store %arg10[%c0_29, %c0_30], %51 {strides = array<i32>} : memref<1x1xf32, #tpu.memory_space<vmem>>, vector<1x1xf32>,
    %c3_i32 = arith.constant 3 : i32
    %53 = arith.cmpi eq, %arg0, %c3_i32 : i32
    %54 = arith.extui %53 : i1 to i32
    %c0_i32_31 = arith.constant 0 : i32
    %55 = arith.cmpi ne, %54, %c0_i32_31 : i32
    scf.if %55 {
      %c0_32 = arith.constant 0 : index
      %c0_33 = arith.constant 0 : index
      %56 = vector.load %arg10[%c0_32, %c0_33] : memref<1x1xf32, #tpu.memory_space<vmem>>, vector<1x1xf32>
      %cst_34 = arith.constant 0.0178571437 : f32
      %57 = vector.broadcast %cst_34 : f32 to vector<1x1xf32>
      %58 = arith.mulf %56, %57 : vector<1x1xf32>
      %c0_35 = arith.constant 0 : index
      %c0_36 = arith.constant 0 : index
      %59 = vector.load %arg10[%c0_35, %c0_36] : memref<1x1xf32, #tpu.memory_space<vmem>>, vector<1x1xf32>
      tpu.vector_store %arg10[%c0_35, %c0_36], %58 {strides = array<i32>} : memref<1x1xf32, #tpu.memory_space<vmem>>, vector<1x1xf32>,
    } else {
    }
    return
  }
  func.func @transform_0(%arg0: i32) -> (i32, i32) {
    %c0_i32 = arith.constant 0 : i32
    %c0_i32_0 = arith.constant 0 : i32
    return %arg0, %c0_i32 : i32, i32
  }
  func.func @transform_1(%arg0: i32) -> (i32, i32) {
    %c0_i32 = arith.constant 0 : i32
    %c0_i32_0 = arith.constant 0 : i32
    return %arg0, %c0_i32 : i32, i32
  }
  func.func @transform_2(%arg0: i32) -> (i32, i32) {
    %c0_i32 = arith.constant 0 : i32
    %c0_i32_0 = arith.constant 0 : i32
    return %arg0, %c0_i32 : i32, i32
  }
  func.func @transform_3(%arg0: i32) -> (i32, i32) {
    %c0_i32 = arith.constant 0 : i32
    %c0_i32_0 = arith.constant 0 : i32
    %c0_i32_1 = arith.constant 0 : i32
    return %c0_i32, %c0_i32_0 : i32, i32
  }
  func.func @transform_4(%arg0: i32) -> (i32, i32) {
    %c0_i32 = arith.constant 0 : i32
    %c0_i32_0 = arith.constant 0 : i32
    %c0_i32_1 = arith.constant 0 : i32
    return %c0_i32, %c0_i32_0 : i32, i32
  }
  func.func @transform_5(%arg0: i32) -> (i32, i32) {
    %c0_i32 = arith.constant 0 : i32
    %c0_i32_0 = arith.constant 0 : i32
    %c0_i32_1 = arith.constant 0 : i32
    return %c0_i32, %c0_i32_0 : i32, i32
  }
  func.func @transform_6(%arg0: i32) -> (i32, i32) {
    %c0_i32 = arith.constant 0 : i32
    %c0_i32_0 = arith.constant 0 : i32
    %c0_i32_1 = arith.constant 0 : i32
    return %c0_i32, %c0_i32_0 : i32, i32
  }
  func.func @transform_7(%arg0: i32) -> (i32, i32) {
    %c0_i32 = arith.constant 0 : i32
    %c0_i32_0 = arith.constant 0 : i32
    %c0_i32_1 = arith.constant 0 : i32
    return %c0_i32, %c0_i32_0 : i32, i32
  }
  func.func @transform_8(%arg0: i32) -> (i32, i32) {
    %c0_i32 = arith.constant 0 : i32
    %c0_i32_0 = arith.constant 0 : i32
    %c0_i32_1 = arith.constant 0 : i32
    return %c0_i32, %c0_i32_0 : i32, i32
  }
  func.func @transform_9(%arg0: i32) -> (i32, i32) {
    %c0_i32 = arith.constant 0 : i32
    %c0_i32_0 = arith.constant 0 : i32
    %c0_i32_1 = arith.constant 0 : i32
    return %c0_i32, %c0_i32_0 : i32, i32
  }
}

</mosaic_0001>

<bundles_post_ra>
// kernel: tpu_custom_call.1
= control target key start
LH: loop header
LB: loop body
LE: loop exit
PB: predicated region body
PF: predicated region fallthrough
CT: control target
= control target key end

     0   :  { %s1855_s0 = inlined_call_operand.hbm [shape: f32[28,32], index: 0, kind: input, shape index: {}]   ;;  %s1856_s1 = inlined_call_operand.hbm [shape: f32[28,64], index: 1, kind: input, shape index: {}]   ;;  %s1857_s2 = inlined_call_operand.hbm [shape: f32[28,64], index: 2, kind: input, shape index: {}]   ;;  %s1858_s3 = inlined_call_operand.hbm [shape: f32[32,128], index: 3, kind: input, shape index: {}]   ;;  %s1859_s4 = inlined_call_operand.vmem [shape: f32[1,128], index: 4, kind: input, shape index: {}]   ;;  %s1860_s5 = inlined_call_operand.hbm [shape: f32[128,128], index: 5, kind: input, shape index: {}]   ;;  %s1861_s6 = inlined_call_operand.vmem [shape: f32[1,128], index: 6, kind: input, shape index: {}]   ;;  %s1862_s7 = inlined_call_operand.hbm [shape: f32[128,128], index: 7, kind: input, shape index: {}]   ;;  %s1863_s8 = inlined_call_operand.vmem [shape: f32[1,128], index: 8, kind: input, shape index: {}]   ;;  %s1864_s9 = inlined_call_operand.hbm [shape: f32[1,1], index: 9, kind: output, shape index: {}]  }
   0x1   :  { %1884 = sst [smem:[#allocation21_spill]] %s1856_s1 }
   0x2   :  { %1885 = sst [smem:[#allocation22_spill]] %s1858_s3 }
   0x3   :  { %1886 = sst [smem:[#allocation23_spill]] %s1861_s6 }
   0x4   :  { %1887 = sst [smem:[#allocation24_spill]] %s1863_s8 }
   0x5   :  { %1888 = sst [smem:[#allocation25_spill]] %s1864_s9 }
   0x6   :  { %14 = vsyncpa [#allocation3], 0 }
   0x7   :  { %16 = vsyncpa [#allocation3 + $0x1], 0 }
   0x8   :  { %17 = vsyncpa [#allocation6], 0 }
   0x9   :  { %19 = vsyncpa [#allocation6 + $0x1], 0 }
   0xa   :  { %20 = vsyncpa [#allocation9], 0 }
   0xb   :  { %21 = vsyncpa [#allocation12], 0 }
   0xc   :  { %22 = vsyncpa [#allocation4], 0  ;;  %s1522_s30 = smov 0   ;;  %s1524_s10 = smov 0  }
   0xd   :  { %s1526_s11 = smov 0   ;;  %s1528_s12 = smov 0  }
   0xe LB: > { %s1541_s13 = sadd.s32 4294967295, %s1456_s12   ;;  %p48_p0 = scmp.ne.s32.totalorder %s1448_s10, %s1444_s30  ;;  %s1456_s12 = sphi %s1528_s12, %s1917_s12   ;;  %s1452_s11 = sphi %s1526_s11, %s1921_s11   ;;  %s1448_s10 = sphi %s1524_s10, %s1920_s10   ;;  %s1444_s30 = sphi %s1522_s30, %s1919_s30  }
   0xf   : > { %p1865_p1 = scmp.eq.s32.totalorder %s1541_s13, 0  ;;  %p905_p2 = scmp.ge.s32.totalorder %s1456_s12, 1 }
  0x10   : > { %p258_p3 = scmp.lt.s32.totalorder %s1456_s12, 5  ;;  %s1458_s16 = smov [#allocation8]  }
  0x11   : > { %p1550_p5 = por %p1865_p1, %p48_p0  ;;  %s270_s17 = sshll.u32 %s1458_s16, 4  ;;  %s271_s17 = int_to_ptr.vmem [resolvable:$true] %s270_s17 }
  0x12   : > { %p1554_p6 = pnand %p905_p2, %p258_p3  ;;  %s1567_s19 = sadd.s32 1, %s1456_s12  }
  0x13   : > { %s1889_s14 = scalar_select %p1550_p5, 1, 0 }
  0x14   : > { %s1890_s15 = scalar_select %p1554_p6, 1, 0 }
  0x15   : > { %p1130_p7 = pneg %p1554_p6  ;;  %1892 = sst [smem:[#allocation19_spill]] %s1567_s19 }
  0x16   : > { %s35_s20 = sadd.s32 1, %s1452_s11  ;;  %s32_s21 = ssub.s32 %s1456_s12, %s1567_s19 }
  0x17   : > { %p1562_p8 = pnand %p1130_p7, %p1865_p1  ;;  %s1893_s3 = sld [smem:[#allocation22_spill]] }
  0x19   : > { %s1891_s18 = scalar_select %p1562_p8, 1, 0 }
  0x1a   : > { %p1580_p10 = pneg %p1562_p8 }
  0x1c   : > { %s1894_s27 = scalar_select %p1580_p10, 1, 0 }
  0x1d   : > { %s1206_s24 = scalar_lea.hbm %s1893_s3, 512 }
  0x1e   : > { %p1207_p9 = scmp.ne.s32.totalorder %s1893_s3, %s1206_s24  ;;  %p1213_p13 = scmp.lt.u32.totalorder %s1206_s24, %s1893_s3 }
  0x20   : > { %p1209_p11 = pnand %p1580_p10, %p1207_p9 }
  0x22   : > { %p1210_p12 = pneg %p1209_p11 }
  0x24   : > { %p1215_p0 = pnand %p1213_p13, %p1210_p12 }
  0x26   : > { %1218 = shalt.err (!%p1215_p0)
}
  0x27   : > { %s1219_s30 = scalar_lea.vmem %s271_s17, 512  ;;  %p1227_p4 = scmp.lt.s32.totalorder %s271_s17, %s271_s17 }
  0x28   : > { %p1220_p2 = scmp.ne.s32.totalorder %s271_s17, %s1219_s30  ;;  %p1228_p1 = scmp.lt.s32.totalorder %s1219_s30, %s1219_s30 }
  0x2a   : > { %p1222_p3 = pnand %p1220_p2, %p1580_p10  ;;  %p1229_p5 = por %p1228_p1, %p1227_p4 }
  0x2c   : > { %p1223_p7 = pneg %p1222_p3 }
  0x2e   : > { %p1230_p6 = pnand %p1229_p5, %p1223_p7 }
  0x30   : > { %1233 = shalt.err (!%p1230_p6)
}
  0x31   : > { %s1869_s16 = smov 128   ;;  %s1871_s22 = smov 8  }
  0x32   : > { %1133 = dma.hbm_to_vmem [thread:$0]  (!%p1562_p8), %s1893_s3, 512, %s271_s17, [#allocation9], %s1869_s16, %s1869_s16, %s1871_s22  }
  0x33   : > { %p33_p1 = scmp.eq.s32.totalorder %s32_s21, 0  ;;  %p42_p4 = scmp.ne.s32.totalorder %s1452_s11, %s1448_s10 }
  0x34   : > { %p43_p5 = scmp.eq.s32.totalorder %s1456_s12, 0  ;;  %p1153_p6 = scmp.lt.s32.totalorder %s1456_s12, 4 }
  0x35   : > { %s1604_s25 = scalar_select %p33_p1, %s1452_s11, %s35_s20  }
  0x36   : > { %p44_p9 = por %p43_p5, %p42_p4  ;;  %s1868_s26 = sand.u32 1, %s1452_s11  }
  0x37   : > { %1895 = sst [smem:[#allocation20_spill]] %s1604_s25  ;;  %s1609_s28 = sshll.u32 %s1868_s26, 3 }
  0x38   : > { %s1612_s29 = sshll.u32 %s1456_s12, 7  ;;  %p1614_p11 = pnand %p1153_p6, %p44_p9 }
  0x39   : > { %s337_s17 = sand.u32 1, %s1456_s12   ;;  %s1897_s1 = sld [smem:[#allocation21_spill]] }
  0x3a   : > { %s1896_s30 = scalar_select %p1614_p11, 1, 0 }
  0x3b   : > { %s341_s24 = scalar_lea.vmem [#allocation5], %s1609_s28  ;;  %s1461_s16 = smov [#allocation10]  }
  0x3c   : > { %s348_s26 = sshll.u32 %s341_s24, 4  ;;  %s1628_s22 = sshll.u32 %s1461_s16, 4  ;;  %s1626_s26 = int_to_ptr.vmem [resolvable:$true] %s348_s26  ;;  %s287_s22 = int_to_ptr.vmem [resolvable:$true] %s1628_s22 }
  0x3d   : > { %s1630_s3 = scalar_lea.sflag [#allocation6], %s337_s17  ;;  %p1636_p13 = pneg %p1614_p11 }
  0x3f   : > { %s1623_s20 = scalar_lea.hbm %s1897_s1, %s1612_s29  ;;  %s1239_s24 = scalar_lea.hbm %s1897_s1, 512 }
  0x40   : > { %s1234_s25 = scalar_lea.hbm %s1623_s20, 128  ;;  %p1240_p3 = scmp.lt.u32.totalorder %s1623_s20, %s1897_s1 }
  0x41   : > { %p1235_p12 = scmp.ne.s32.totalorder %s1623_s20, %s1234_s25  ;;  %p1241_p7 = scmp.lt.u32.totalorder %s1239_s24, %s1234_s25 }
  0x42   : > { %s1898_s12 = scalar_select %p1636_p13, 1, 0 }
  0x43   : > { %p1237_p0 = pnand %p1636_p13, %p1235_p12  ;;  %p1242_p1 = por %p1241_p7, %p1240_p3 }
  0x44   : > { %p1243_p4 = scmp.lt.u32.totalorder %s1234_s25, %s1623_s20 }
  0x45   : > { %p1238_p2 = pneg %p1237_p0 }
  0x46   : > { %p1244_p5 = por %p1243_p4, %p1242_p1 }
  0x48   : > { %p1245_p6 = pnand %p1244_p5, %p1238_p2 }
  0x4a   : > { %1248 = shalt.err (!%p1245_p6)
}
  0x4b   : > { %s1249_s17 = scalar_lea.vmem %s1626_s26, 128  ;;  %s1462_s21 = smov [#allocation5]  }
  0x4c   : > { %p1250_p9 = scmp.ne.s32.totalorder %s1626_s26, %s1249_s17  ;;  %s1254_s23 = sshll.u32 %s1462_s21, 4  ;;  %s1255_s23 = int_to_ptr.vmem [resolvable:$false] %s1254_s23 }
  0x4d   : > { %s1256_s19 = scalar_lea.vmem %s1255_s23, 256  ;;  %p1257_p8 = scmp.lt.s32.totalorder %s1626_s26, %s1255_s23 }
  0x4e   : > { %p1252_p12 = pnand %p1250_p9, %p1636_p13  ;;  %p1258_p10 = scmp.lt.s32.totalorder %s1256_s19, %s1249_s17 }
  0x50   : > { %p1253_p0 = pneg %p1252_p12  ;;  %p1259_p3 = por %p1258_p10, %p1257_p8 }
  0x52   : > { %p1260_p7 = pnand %p1259_p3, %p1253_p0 }
  0x54   : > { %1263 = shalt.err (!%p1260_p7)
}
  0x55   : > { %1146 = dma.hbm_to_vmem [thread:$0]  (!%p1614_p11), %s1623_s20, 128, %s1626_s26, %s1630_s3  }
  0x56   : > { %s1264_s16 = scalar_lea.hbm %s1860_s5, 2048  ;;  %p1899_p8 = scmp.ne.s32.totalorder %s1894_s27, 0 }
  0x57   : > { %p1265_p2 = scmp.ne.s32.totalorder %s1860_s5, %s1264_s16  ;;  %p1271_p4 = scmp.lt.u32.totalorder %s1264_s16, %s1860_s5 }
  0x59   : > { %p1267_p10 = pnand %p1265_p2, %p1899_p8 }
  0x5b   : > { %p1268_p1 = pneg %p1267_p10 }
  0x5d   : > { %p1273_p5 = pnand %p1271_p4, %p1268_p1 }
  0x5f   : > { %1276 = shalt.err (!%p1273_p5)
}
  0x60   : > { %s1277_s19 = scalar_lea.vmem %s287_s22, 2048  ;;  %p1285_p0 = scmp.lt.s32.totalorder %s287_s22, %s287_s22 }
  0x61   : > { %p1278_p6 = scmp.ne.s32.totalorder %s287_s22, %s1277_s19  ;;  %p1286_p3 = scmp.lt.s32.totalorder %s1277_s19, %s1277_s19 }
  0x63   : > { %p1280_p9 = pnand %p1278_p6, %p1899_p8  ;;  %p1287_p7 = por %p1286_p3, %p1285_p0 }
  0x65   : > { %p1281_p12 = pneg %p1280_p9 }
  0x67   : > { %p1288_p11 = pnand %p1287_p7, %p1281_p12 }
  0x69   : > { %1291 = shalt.err (!%p1288_p11)
}
  0x6a   : > { %p1900_p2 = scmp.ne.s32.totalorder %s1891_s18, 0  ;;  %s1901_s1 = smov 8  }
  0x6b   : > { %s1902_s26 = smov 128   ;;  %s1463_s24 = smov [#allocation11]  }
  0x6c   : > { %1136 = dma.hbm_to_vmem [thread:$0]  (!%p1900_p2), %s1860_s5, 2048, %s287_s22, [#allocation9], %s1902_s26, %s1902_s26, %s1901_s1  }
  0x6d   : > { %s302_s16 = sshll.u32 %s1463_s24, 4  ;;  %s1292_s23 = scalar_lea.hbm %s1862_s7, 2048  ;;  %s303_s16 = int_to_ptr.vmem [resolvable:$true] %s302_s16 }
  0x6e   : > { %p1293_p11 = scmp.ne.s32.totalorder %s1862_s7, %s1292_s23  ;;  %p1299_p4 = scmp.lt.u32.totalorder %s1292_s23, %s1862_s7 }
  0x70   : > { %p1295_p10 = pnand %p1293_p11, %p1899_p8 }
  0x72   : > { %p1296_p1 = pneg %p1295_p10 }
  0x74   : > { %p1301_p5 = pnand %p1299_p4, %p1296_p1 }
  0x76   : > { %1304 = shalt.err (!%p1301_p5)
}
  0x77   : > { %s1305_s22 = scalar_lea.vmem %s303_s16, 2048  ;;  %p1313_p0 = scmp.lt.s32.totalorder %s303_s16, %s303_s16 }
  0x78   : > { %p1306_p6 = scmp.ne.s32.totalorder %s303_s16, %s1305_s22  ;;  %p1314_p3 = scmp.lt.s32.totalorder %s1305_s22, %s1305_s22 }
  0x7a   : > { %p1308_p9 = pnand %p1306_p6, %p1899_p8  ;;  %p1315_p7 = por %p1314_p3, %p1313_p0 }
  0x7c   : > { %p1309_p12 = pneg %p1308_p9 }
  0x7e   : > { %p1316_p13 = pnand %p1315_p7, %p1309_p12 }
  0x80   : > { %1319 = shalt.err (!%p1316_p13)
}
  0x81   : > { %1139 = dma.hbm_to_vmem [thread:$0]  (!%p1900_p2), %s1862_s7, 2048, %s303_s16, [#allocation12], %s1902_s26, %s1902_s26, %s1901_s1  }
  0x82   : > { %s1707_s20 = scalar_lea.hbm %s1855_s0, %s1612_s29  ;;  %s323_s18 = scalar_lea.vmem [#allocation2], %s1609_s28 }
  0x83   : > { %s330_s25 = sshll.u32 %s323_s18, 4  ;;  %s1903_s24 = sand.u32 1, %s1452_s11   ;;  %s331_s25 = int_to_ptr.vmem [resolvable:$true] %s330_s25 }
  0x84   : > { %s320_s21 = scalar_lea.sflag [#allocation3], %s1903_s24  ;;  %s1320_s17 = scalar_lea.hbm %s1707_s20, 128 }
  0x85   : > { %p1321_p13 = scmp.ne.s32.totalorder %s1707_s20, %s1320_s17  ;;  %p1904_p8 = scmp.ne.s32.totalorder %s1898_s12, 0 }
  0x86   : > { %s1325_s16 = scalar_lea.hbm %s1855_s0, 512  ;;  %p1326_p2 = scmp.lt.u32.totalorder %s1707_s20, %s1855_s0 }
  0x87   : > { %p1323_p11 = pnand %p1321_p13, %p1904_p8  ;;  %p1327_p1 = scmp.lt.u32.totalorder %s1325_s16, %s1320_s17 }
  0x88   : > { %p1329_p5 = scmp.lt.u32.totalorder %s1320_s17, %s1707_s20 }
  0x89   : > { %p1324_p10 = pneg %p1323_p11  ;;  %p1328_p4 = por %p1327_p1, %p1326_p2 }
  0x8b   : > { %p1330_p6 = por %p1329_p5, %p1328_p4 }
  0x8d   : > { %p1331_p9 = pnand %p1330_p6, %p1324_p10 }
  0x8f   : > { %1334 = shalt.err (!%p1331_p9)
}
  0x90   : > { %s1335_s22 = scalar_lea.vmem %s331_s25, 128  ;;  %s1464_s6 = smov [#allocation2]  }
  0x91   : > { %p1336_p12 = scmp.ne.s32.totalorder %s331_s25, %s1335_s22  ;;  %s1340_s8 = sshll.u32 %s1464_s6, 4  ;;  %s1341_s8 = int_to_ptr.vmem [resolvable:$false] %s1340_s8 }
  0x92   : > { %s1342_s9 = scalar_lea.vmem %s1341_s8, 256  ;;  %p1343_p7 = scmp.lt.s32.totalorder %s331_s25, %s1341_s8 }
  0x93   : > { %p1338_p0 = pnand %p1336_p12, %p1904_p8  ;;  %p1344_p13 = scmp.lt.s32.totalorder %s1342_s9, %s1335_s22 }
  0x95   : > { %p1339_p3 = pneg %p1338_p0  ;;  %p1345_p11 = por %p1344_p13, %p1343_p7 }
  0x97   : > { %p1346_p1 = pnand %p1345_p11, %p1339_p3 }
  0x99   : > { %1349 = shalt.err (!%p1346_p1)
}
  0x9a   : > { %p1905_p2 = scmp.ne.s32.totalorder %s1896_s30, 0  ;;  %s1733_s24 = scalar_lea.hbm %s1857_s2, %s1612_s29 }
  0x9b   : > { %s359_s17 = scalar_lea.vmem [#allocation7], %s1609_s28  ;;  %s1350_s26 = scalar_lea.hbm %s1733_s24, 128 }
  0x9c   : > { %1143 = dma.hbm_to_vmem [thread:$0]  (!%p1905_p2), %s1707_s20, 128, %s331_s25, %s320_s21  }
  0x9d   : > { %s366_s1 = sshll.u32 %s359_s17, 4  ;;  %p1351_p10 = scmp.ne.s32.totalorder %s1733_s24, %s1350_s26  ;;  %s367_s1 = int_to_ptr.vmem [resolvable:$true] %s366_s1 }
  0x9e   : > { %s1355_s20 = scalar_lea.hbm %s1857_s2, 512  ;;  %p1356_p6 = scmp.lt.u32.totalorder %s1733_s24, %s1857_s2 }
  0x9f   : > { %p1353_p4 = pnand %p1351_p10, %p1904_p8  ;;  %p1357_p9 = scmp.lt.u32.totalorder %s1355_s20, %s1350_s26 }
  0xa0   : > { %p1359_p0 = scmp.lt.u32.totalorder %s1350_s26, %s1733_s24 }
  0xa1   : > { %p1354_p5 = pneg %p1353_p4  ;;  %p1358_p12 = por %p1357_p9, %p1356_p6 }
  0xa3   : > { %p1360_p3 = por %p1359_p0, %p1358_p12 }
  0xa5   : > { %p1361_p7 = pnand %p1360_p3, %p1354_p5 }
  0xa7   : > { %1364 = shalt.err (!%p1361_p7)
}
  0xa8   : > { %s1365_s28 = scalar_lea.vmem %s367_s1, 128  ;;  %s1465_s29 = smov [#allocation7]  }
  0xa9   : > { %p1366_p13 = scmp.ne.s32.totalorder %s367_s1, %s1365_s28  ;;  %s1370_s19 = sshll.u32 %s1465_s29, 4  ;;  %s1371_s19 = int_to_ptr.vmem [resolvable:$false] %s1370_s19 }
  0xaa   : > { %s1372_s22 = scalar_lea.vmem %s1371_s19, 256  ;;  %p1373_p10 = scmp.lt.s32.totalorder %s367_s1, %s1371_s19 }
  0xab   : > { %p1368_p11 = pnand %p1366_p13, %p1904_p8  ;;  %p1374_p4 = scmp.lt.s32.totalorder %s1372_s22, %s1365_s28 }
  0xad   : > { %p1369_p1 = pneg %p1368_p11  ;;  %p1375_p2 = por %p1374_p4, %p1373_p10 }
  0xaf   : > { %p1376_p6 = pnand %p1375_p2, %p1369_p1 }
  0xb1   : > { %1379 = shalt.err (!%p1376_p6)
}
  0xb2   : > { %p1906_p9 = scmp.ne.s32.totalorder %s1896_s30, 0  ;;  %p1907_p5 = scmp.ne.s32.totalorder %s1890_s15, 0 }
  0xb3   : > { %s377_s12 = sand.u32 (!%p1907_p5), 1, %s1448_s10   ;;  %p1908_p8 = scmp.ne.s32.totalorder (!%p1907_p5), %s1889_s14, 0 }
  0xb4   : > { %1149 = dma.hbm_to_vmem [thread:$0]  (!%p1906_p9), %s1733_s24, 128, %s367_s1, %s1630_s3  }
  0xb5   : > { %375 = sbr.rel (%p1907_p5) target bundleno = 1206 (0x4b6), region = 56  ;;  %s1757_s6 = sshll.u32 (!%p1907_p5), %s377_s12, 3 }
  0xb6   : > { %s378_s8 = scalar_lea.sflag (!%p1907_p5), [#allocation3], %s377_s12  ;;  %s381_s9 = scalar_lea.vmem (!%p1907_p5), [#allocation2], %s1757_s6 }
  0xbc   : > { %1423 = dma.done.wait (%p1908_p8), %s378_s8, 128  }
  0xbd   : > { %1425 = vsyncadd (%p1908_p8), %s378_s8, 4294967168  ;;  %s386_s3 = sand.u32 1, %s1541_s13   ;;  %s390_s15 = scalar_lea.vmem [#allocation5], %s1757_s6 }
  0xbe   : > { %s387_s30 = scalar_lea.sflag [#allocation6], %s386_s3 }
  0xbf   : > { %1427 = dma.done.wait (%p1908_p8), %s387_s30, 256  }
  0xc0   : > { %1429 = vsyncadd (%p1908_p8), %s387_s30, 4294967040  ;;  %s399_s27 = scalar_lea.vmem [#allocation7], %s1757_s6  ;;  %p1909_p2 = scmp.eq.s32.totalorder %s1541_s13, 0 }
  0xc2   : > { %1431 = dma.done.wait (%p1909_p2), [#allocation9], 2560   ;;  %p1910_p12 = pmov %p1909_p2 }
  0xc3   : > { %p1911_p0 = pmov %p1909_p2 }
  0xc4   : > { %1433 = vsyncadd (%p1910_p12), [#allocation9], 4294964736 }
  0xc5   : > { %1435 = dma.done.wait (%p1911_p0), [#allocation12], 2048   ;;  %p1912_p3 = pmov %p1911_p0 }
  0xc6   : > { %p1913_p7 = scmp.ne.s32.totalorder %s1541_s13, 0 }
  0xc7   : > { %1437 = vsyncadd (%p1912_p3), [#allocation12], 4294965248  ;;  %vm455_vm0 = vcmask (!%p1913_p7), 0   ;;  %v1466_v0 = vmov (!%p1913_p7), 0.0  }
  0xc8   : > { %454 = sbr.rel (%p1913_p7) target bundleno = 207 (0xcf), region = 84  ;;  %456 = vst.msk [vmem:[#allocation13] sm:$0x1] (!%p1913_p7), %vm455_vm0, %v1466_v0 }
  0xcf PF: > { %v460_v1 = vld [vmem:[#allocation8] sm:$0xff]  ;;  %v461_v2 = vld [vmem:[#allocation8 + $0x8] sm:$0xff]  ;;  %v462_v3 = vld [vmem:[#allocation8 + $0x10] sm:$0xff]  ;;  %v1467_v4 = vmov 0.0|0.0   ;;  %vm1468_vm1 = vmmov 0   ;;  %v1469_v7 = vmov 0.0  }
  0xd0   : > { %1054 = vmatprep.subr.bf16.mxu0 %v1467_v4  ;;  %v1055_v5 = vpack.c.bf16 %v461_v2, %v460_v1  ;;  %v463_v6 = vld [vmem:[#allocation8 + $0x18] sm:$0xff]  ;;  %981 = vmatprep.mubr.msk.f32.mxu0 %vm1468_vm1, %v1469_v7  ;;  %v546_v8 = vld [vmem:[#allocation10] sm:$0xff]  ;;  %v547_v9 = vld [vmem:[#allocation10 + $0x8] sm:$0xff]  ;;  %vm471_vm2 = vcmask 261120   ;;  %s1914_s1 = sld [smem:[#allocation23_spill]]  ;;  %s1915_s23 = sld [smem:[#allocation24_spill]] }
  0xd1   : > { %1060 = vmatprep.subr.bf16.mxu1 %v1467_v4  ;;  %v548_v10 = vld [vmem:[#allocation10 + $0x10] sm:$0xff]  ;;  %v549_v11 = vld [vmem:[#allocation10 + $0x18] sm:$0xff]  ;;  %1016 = vmatprep.mubr.msk.f32.mxu1 %vm1468_vm1, %v1469_v7  ;;  %v1058_v12 = vpack.c.bf16 %v463_v6, %v462_v3  ;;  %v1061_v13 = vpack.c.bf16 %v547_v9, %v546_v8  ;;  %v550_v15 = vld [vmem:[#allocation10 + $0x20] sm:$0xff]  ;;  %s1470_s20 = smov 64   ;;  %vm747_vm3 = vcmask 523264   ;;  %s928_s25 = sshll.u32 %s1541_s13, 3 }
  0xd2   : > { %1056 = vmatpush3.bf16.msra.mxu0 %v1055_v5  ;;  %v1064_v14 = vpack.c.bf16 %v549_v11, %v548_v10  ;;  %v551_v16 = vld [vmem:[#allocation10 + $0x28] sm:$0xff]  ;;  %v457_v17 = vld [vmem:[%s381_s9] sm:$0xff]  ;;  %v554_v22 = vld [vmem:[#allocation10 + $0x40] sm:$0xff]  ;;  %vm766_vm5 = vcmask 0   ;;  %p929_p13 = scmp.ne.s32.totalorder %s1541_s13, 3 }
  0xd3   : > { %1057 = vmatprep.subr.bf16.mxu0 %v1467_v4  ;;  %1062 = vmatpush3.bf16.msra.mxu1 %v1061_v13  ;;  %v1067_v18 = vpack.c.bf16 %v551_v16, %v550_v15  ;;  %v552_v19 = vld [vmem:[#allocation10 + $0x30] sm:$0xff]  ;;  %v553_v20 = vld [vmem:[#allocation10 + $0x38] sm:$0xff]  ;;  %v555_v23 = vld [vmem:[#allocation10 + $0x48] sm:$0xff] }
  0xd4   : > { %1063 = vmatprep.subr.bf16.mxu1 %v1467_v4  ;;  %v1070_v21 = vpack.c.bf16 %v553_v20, %v552_v19  ;;  %v1073_v24 = vpack.c.bf16 %v555_v23, %v554_v22  ;;  %v556_v25 = vld [vmem:[#allocation10 + $0x50] sm:$0xff]  ;;  %v557_v26 = vld [vmem:[#allocation10 + $0x58] sm:$0xff]  ;;  %v558_v28 = vld [vmem:[#allocation10 + $0x60] sm:$0xff]  ;;  %v751_v22 = vlaneseq }
  0xd5   : > { %v1076_v27 = vpack.c.bf16 %v557_v26, %v556_v25  ;;  %v559_v29 = vld [vmem:[#allocation10 + $0x68] sm:$0xff]  ;;  %v560_v31 = vld [vmem:[#allocation10 + $0x70] sm:$0xff]  ;;  %v561_v32 = vld [vmem:[#allocation10 + $0x78] sm:$0xff] }
  0xd6   : > { %1059 = vmatpush3.bf16.msra.mxu0 %v1058_v12  ;;  %v1079_v30 = vpack.c.bf16 %v559_v29, %v558_v28  ;;  %v1082_v33 = vpack.c.bf16 %v561_v32, %v560_v31  ;;  %v640_v34 = vld [vmem:[#allocation11] sm:$0xff]  ;;  %v641_v35 = vld [vmem:[#allocation11 + $0x8] sm:$0xff]  ;;  %v642_v36 = vld [vmem:[#allocation11 + $0x10] sm:$0xff]  ;;  %v752_v23 = vshrl.u32 %v751_v22, 7 }
  0xd7   : > { %1084 = vmatprep.subr.bf16.mxu0 %v1467_v4  ;;  %1065 = vmatpush3.bf16.msra.mxu1 %v1064_v14  ;;  %v1085_v37 = vpack.c.bf16 %v641_v35, %v640_v34  ;;  %v643_v38 = vld [vmem:[#allocation11 + $0x18] sm:$0xff]  ;;  %v644_v40 = vld [vmem:[#allocation11 + $0x20] sm:$0xff]  ;;  %v645_v41 = vld [vmem:[#allocation11 + $0x28] sm:$0xff] }
  0xd8   : > { %1066 = vmatprep.subr.bf16.mxu1 %v1467_v4  ;;  %v1088_v39 = vpack.c.bf16 %v643_v38, %v642_v36  ;;  %v1091_v42 = vpack.c.bf16 %v645_v41, %v644_v40  ;;  %v646_v43 = vld [vmem:[#allocation11 + $0x30] sm:$0xff]  ;;  %v647_v44 = vld [vmem:[#allocation11 + $0x38] sm:$0xff]  ;;  %v648_v46 = vld [vmem:[#allocation11 + $0x40] sm:$0xff] }
  0xd9   : > { %982 = vmatmul.mubr.msk.f32.vlgmr.msra.gmra.mrb[0].mxu0 %vm471_vm2, %v457_v17  ;;  %v1094_v45 = vpack.c.bf16 %v647_v44, %v646_v43  ;;  %v649_v47 = vld [vmem:[#allocation11 + $0x48] sm:$0xff]  ;;  %v650_v49 = vld [vmem:[#allocation11 + $0x50] sm:$0xff]  ;;  %v651_v50 = vld [vmem:[#allocation11 + $0x58] sm:$0xff] }
  0xda   : > { %1051 = vmatprep.mubr.msk.f32.mxu0 %vm1468_vm1, %v1469_v7  ;;  %1086 = vmatpush3.bf16.msra.mxu0 %v1085_v37  ;;  %v1097_v48 = vpack.c.bf16 %v649_v47, %v648_v46  ;;  %v1100_v51 = vpack.c.bf16 %v651_v50, %v650_v49  ;;  %v652_v52 = vld [vmem:[#allocation11 + $0x60] sm:$0xff]  ;;  %v653_v53 = vld [vmem:[#allocation11 + $0x68] sm:$0xff]  ;;  %v924_v55 = vld [vmem:[%s1859_s4] ss:$0 sm:$0xff] }
  0xdb   : > { %1068 = vmatpush3.bf16.msra.mxu1 %v1067_v18  ;;  %1087 = vmatprep.subr.bf16.mxu0 %v1467_v4  ;;  %v1103_v54 = vpack.c.bf16 %v653_v53, %v652_v52  ;;  %v654_v60 = vld [vmem:[#allocation11 + $0x70] sm:$0xff]  ;;  %v655_v61 = vld [vmem:[#allocation11 + $0x78] sm:$0xff]  ;;  %v458_v13 = vld [vmem:[%s390_s15] sm:$0xff] }
  0xdc   : > { %1069 = vmatprep.subr.bf16.mxu1 %v1467_v4  ;;  %v1106_v62 = vpack.c.bf16 %v655_v61, %v654_v60  ;;  %v926_v63 = vld [vmem:[%s1914_s1] ss:$0 sm:$0xff] }
  0xdd   : > { %v459_v15 = vld [vmem:[%s399_s27] sm:$0xff] }
  0xde   : > { %1089 = vmatpush3.bf16.msra.mxu0 %v1088_v39  ;;  %v737_v16 = vsub.f32 %v458_v13, %v459_v15 }
  0xdf   : > { %1071 = vmatpush3.bf16.msra.mxu1 %v1070_v21  ;;  %1090 = vmatprep.subr.bf16.mxu0 %v1467_v4 }
  0xe0   : > { %1072 = vmatprep.subr.bf16.mxu1 %v1467_v4 }
  0xe2   : > { %1092 = vmatpush3.bf16.msra.mxu0 %v1091_v42 }
  0xe3   : > { %1074 = vmatpush3.bf16.msra.mxu1 %v1073_v24  ;;  %1093 = vmatprep.subr.bf16.mxu0 %v1467_v4  ;;  %v754_v24 = vstv %s928_s25 }
  0xe4   : > { %1075 = vmatprep.subr.bf16.mxu1 %v1467_v4  ;;  %v755_v25 = vadd.s32 %v754_v24, %v752_v23 }
  0xe6   : > { %1095 = vmatpush3.bf16.msra.mxu0 %v1094_v45  ;;  %vm756_vm4 = vcmp.lt.s32.totalorder %v755_v25, 28 }
  0xe7   : > { %1077 = vmatpush3.bf16.msra.mxu1 %v1076_v27  ;;  %1096 = vmatprep.subr.bf16.mxu0 %v1467_v4 }
  0xe8   : > { %1078 = vmatprep.subr.bf16.mxu1 %v1467_v4 }
  0xea   : > { %1098 = vmatpush3.bf16.msra.mxu0 %v1097_v48 }
  0xeb   : > { %1080 = vmatpush3.bf16.msra.mxu1 %v1079_v30  ;;  %1099 = vmatprep.subr.bf16.mxu0 %v1467_v4 }
  0xec   : > { %1081 = vmatprep.subr.bf16.mxu1 %v1467_v4 }
  0xee   : > { %1101 = vmatpush3.bf16.msra.mxu0 %v1100_v51 }
  0xef   : > { %1083 = vmatpush3.bf16.msra.mxu1 %v1082_v33  ;;  %1102 = vmatprep.subr.bf16.mxu0 %v1467_v4  ;;  %v758_v33 = vld [vmem:[#allocation13] sm:$0x1] }
  0xf2   : > { %1104 = vmatpush3.bf16.msra.mxu0 %v1103_v54 }
  0xf3   : > { %1105 = vmatprep.subr.bf16.mxu0 %v1467_v4  ;;  %v927_v4 = vld [vmem:[%s1915_s23] ss:$0 sm:$0xff] }
  0xf6   : > { %1107 = vmatpush3.bf16.msra.mxu0 %v1106_v62 }
 0x1ac   : > { %v541_v56 = vpop.f32.mrb[0].mxu0 }
 0x1ad   : > { %v542_v57 = vadd.f32 %v924_v55, %v541_v56  ;;  %v983_v58 = vpop.f32.mrb[1].mxu0 }
 0x1af   : > { %v545_v59 = vmax.f32 %v542_v57, 0.0 }
 0x1b1   : > { %1017 = vmatmul.mubr.f32.vlgmr.msra.gmra.mrb[0].mxu1 %v545_v59 }
 0x284   : > { %v635_v0 = vpop.f32.mrb[0].mxu1 }
 0x285   : > { %v636_v1 = vadd.f32 %v926_v63, %v635_v0  ;;  %v1018_v2 = vpop.f32.mrb[1].mxu1 }
 0x287   : > { %v639_v3 = vmax.f32 %v636_v1, 0.0 }
 0x289   : > { %1052 = vmatmul.mubr.f32.vlgmr.msra.gmra.mrb[2].mxu0 %v639_v3 }
 0x35c   : > { %v729_v5 = vpop.f32.mrb[2].mxu0 }
 0x35d   : > { %v730_v6 = vadd.f32 %v927_v4, %v729_v5  ;;  %v1053_v7 = vpop.f32.mrb[3].mxu0 }
 0x35f   : > { %1202 = vtanh.f32 %v730_v6  ;;  %v738_v12 = vmul.f32 2.0, %v730_v6 }
 0x361   : > { %v739_v14 = vsub.f32 %v738_v12, %v458_v13 }
 0x363   : > { %v740_v17 = vsub.f32 %v739_v14, %v459_v15 }
 0x365   : > { %v741_v18 = vmul.f32 %v740_v17, %v737_v16 }
 0x369   : > { %v1203_v8 = vpop.eup %1202 }
 0x36a   : > { %v734_v9 = vsub.f32 0.0, %v1203_v8 }
 0x36c   : > { %v735_v10 = vmul.f32 1.442695, %v734_v9 }
 0x36e   : > { %1204 = vpow2.f32 %v735_v10 }
 0x378   : > { %v1205_v11 = vpop.eup %1204 }
 0x379   : > { %743 = vrot.lane.b32.xlu0 %v1205_v11, %s1470_s20 }
 0x3eb   : > { %v744_v19 = vpop.permute.xlu0 %743 }
 0x3ec   : > { %v746_v20 = vmul.f32 %v744_v19, %v741_v18 }
 0x3ee   : > { %v748_v21 = vsel %vm747_vm3, %v746_v20, 0.0 }
 0x3ef   : > { %749 = vadd.xlane.f32.xlu0 %v748_v21 }
 0x47c   : > { %v750_v26 = vpop.xlane.xlu0 %749 }
 0x47d   : > { %v757_v27 = vsel %vm756_vm4, %v750_v26, 0.0 }
 0x47e   : > { %v759_v28 = vrot.slane %v757_v27, 4 }
 0x480   : > { %v760_v29 = vadd.f32 %v759_v28, %v757_v27 }
 0x482   : > { %v761_v30 = vrot.slane %v760_v29, 2 }
 0x484   : > { %v762_v31 = vadd.f32 %v761_v30, %v760_v29 }
 0x486   : > { %v763_v32 = vrot.slane %v762_v31, 1  ;;  %771 = sbr.rel (%p929_p13) target bundleno = 1175 (0x497), region = 88 }
 0x488   : > { %v764_v34 = vadd.f32 %v763_v32, %v762_v31 }
 0x48a   : > { %v765_v35 = vadd.f32 %v764_v34, %v758_v33 }
 0x48c   : > { %767 = vst.msk [vmem:[#allocation13] sm:$0x1] %vm766_vm5, %v765_v35 }
 0x493   : > { %v772_v36 = vld [vmem:[#allocation13] sm:$0x1] }
 0x494   : > { %v773_v37 = vmul.f32 0.017857144, %v772_v36 }
 0x496   : > { %774 = vst.msk [vmem:[#allocation13] sm:$0x1] %vm766_vm5, %v773_v37 }
 0x497 PF: > { %p1157_p11 = scmp.eq.s32.totalorder %s1541_s13, 3  ;;  %s1471_s21 = smov [#allocation13]  }
 0x498   : > { %s782_s28 = sshll.u32 %s1471_s21, 4  ;;  %s783_s28 = int_to_ptr.vmem [resolvable:$true] %s782_s28 }
 0x499   : > { %s1380_s29 = scalar_lea.vmem %s783_s28, 16  ;;  %s1386_s19 = scalar_lea.vmem %s783_s28, 32 }
 0x49a   : > { %p1381_p1 = scmp.ne.s32.totalorder %s783_s28, %s1380_s29  ;;  %p1387_p6 = scmp.lt.s32.totalorder %s783_s28, %s783_s28 }
 0x49b   : > { %p1388_p9 = scmp.lt.s32.totalorder %s1386_s19, %s1380_s29 }
 0x49c   : > { %p1382_p10 = pnand %p1381_p1, %p1157_p11 }
 0x49d   : > { %p1389_p5 = por %p1388_p9, %p1387_p6 }
 0x49e   : > { %p1383_p4 = pneg %p1382_p10 }
 0x4a0   : > { %p1390_p8 = pnand %p1389_p5, %p1383_p4 }
 0x4a2   : > { %1393 = shalt.err (!%p1390_p8)
}
 0x4a3   : > { %s1916_s6 = sld [smem:[#allocation25_spill]] }
 0x4a9   : > { %s1394_s8 = scalar_lea.hbm %s1916_s6, 16 }
 0x4aa   : > { %p1395_p2 = scmp.ne.s32.totalorder %s1916_s6, %s1394_s8  ;;  %p1400_p3 = scmp.lt.u32.totalorder %s1394_s8, %s1916_s6 }
 0x4ac   : > { %p1396_p12 = pnand %p1395_p2, %p1157_p11 }
 0x4ae   : > { %p1397_p0 = pneg %p1396_p12 }
 0x4b0   : > { %p1402_p7 = pnand %p1400_p3, %p1397_p0 }
 0x4b2   : > { %1405 = shalt.err (!%p1402_p7)
}
 0x4b3   : > { %1127 = dma.vmem_to_hbm [thread:$0]  (%p1157_p11), %s783_s28, 16, %s1916_s6, [#allocation4]  }
 0x4b4   : > { %1439 = dma.done.wait (%p1157_p11), [#allocation4], 16  }
 0x4b5   : > { %1441 = vsyncadd (%p1157_p11), [#allocation4], 4294967280 }
 0x4b6 PF: > { %s1917_s12 = sld [smem:[#allocation19_spill]]  ;;  %s1918_s18 = sld [smem:[#allocation20_spill]] }
 0x4b7   : > { %s1919_s30 = smov %s1448_s10  ;;  %s1920_s10 = smov %s1452_s11 }
 0x4bc   : > { %p25_p13 = scmp.ge.s32.totalorder %s1917_s12, 6   ;;  %s1921_s11 = smov %s1918_s18 }
 0x4be   :  { %27 = sbr.rel (!%p25_p13) target bundleno = 14 (0xe), region = 137 }
 0x4c5   :  { %795 = vsyncpa [#allocation3], 1 }
 0x4c6   :  { %797 = vsyncpa [#allocation3 + $0x1], 1 }
 0x4c7   :  { %798 = vsyncpa [#allocation6], 1 }
 0x4c8   :  { %800 = vsyncpa [#allocation6 + $0x1], 1 }
 0x4c9   :  { %801 = vsyncpa [#allocation9], 1 }
 0x4ca   :  { %802 = vsyncpa [#allocation12], 1 }
 0x4cb   :  { %803 = vsyncpa [#allocation4], 1 }
 0x4cc   :  { %805 = vsyncpa [#allocation4 + $0x1], 1 }

</bundles_post_ra>
